<compile_context>
chip_gen: v7x
topology: tpu7x:2x2x1
jax: 0.10.0
libtpu: 0.0.40
codegen_flags: <defaults>
</compile_context>

<pallas_src>
import re
import numpy as np
import jax
import jax.numpy as jnp
from jax.experimental import pallas as pl
from jax.experimental.pallas import tpu as pltpu


def _embedding_kernel(idx_ref, table_ref, out_ref):
    """One grid step: gather TB precomputed rows via a one-hot MXU matmul."""
    idx = idx_ref[...]                                   # (TB, 1) int32
    TB = idx.shape[0]
    V = table_ref.shape[0]

    vocab_iota = jax.lax.broadcasted_iota(jnp.int32, (TB, V), 1)
    onehot = (idx == vocab_iota).astype(jnp.float32)     # (TB, V)
    out_ref[...] = jnp.dot(
        onehot, table_ref[...], preferred_element_type=jnp.float32
    ).astype(out_ref.dtype)


def custom_embedding_forward(x, table):
    """x: (B, S) int token ids; table: (V, D) precomputed rows. -> (B, S, D)."""
    B, S = x.shape
    V, D = table.shape
    N = B * S

    # Token-block size: single block for small N (N_pad == next multiple of 8),
    # otherwise the largest of {2048,...,128} that divides N exactly so no
    # padding / post-slice copy is needed; fall back to 2048 + padding.
    MAX_TB = 2048
    if N <= MAX_TB:
        TB = max(8, ((N + 7) // 8) * 8)
    else:
        TB = MAX_TB
        for cand in (2048, 1024, 512, 256, 128):
            if N % cand == 0:
                TB = cand
                break
    n_blocks = (N + TB - 1) // TB
    N_pad = n_blocks * TB

    idx = x.reshape(N).astype(jnp.int32)
    if N_pad != N:
        idx = jnp.pad(idx, (0, N_pad - N))               # pad rows use token 0
    idx2d = idx.reshape(N_pad, 1)

    out = pl.pallas_call(
        _embedding_kernel,
        out_shape=jax.ShapeDtypeStruct((N_pad, D), jnp.float32),
        grid=(n_blocks,),
        in_specs=[
            pl.BlockSpec((TB, 1), lambda i: (i, 0)),      # token ids (blocked)
            pl.BlockSpec((V, D), lambda i: (0, 0)),       # table (VMEM resident)
        ],
        out_specs=pl.BlockSpec((TB, D), lambda i: (i, 0)),  # width-D output
        compiler_params=pltpu.CompilerParams(
            dimension_semantics=("parallel",),
        ),
    )(idx2d, table)

    if N_pad != N:
        out = out[:N]
    return out.reshape(B, S, D)


def build_embedding_table(token2idx, embedding_dim, key):
    """Host-side parameter setup (mirrors __init__ + number_embedding_function).

    Returns the fused (V, D) table used by the kernel plus the raw
    learned / softsign / numeric-mask arrays for the independent reference.
    """
    V = len(token2idx)
    D = embedding_dim

    num_tokens = {t for t in token2idx if re.match(r"<num>\d+</num>", t)}
    num_values = [float(re.findall(r"\d+", t)[0]) for t in num_tokens]
    if num_values:
        mean = float(np.mean(num_values))
        std = float(np.std(num_values)) + 1e-6
    else:
        mean, std = 0.0, 1e-6                            # guard: no numeric tokens

    learned = np.asarray(jax.random.normal(key, (V, D), jnp.float32))
    soft = np.zeros((V,), dtype=np.float32)
    mask = np.zeros((V,), dtype=np.float32)

    table = learned.copy()
    for t in num_tokens:
        n = (float(re.findall(r"\d+", t)[0]) - mean) / std
        s = np.float32(n / (1.0 + abs(n)))
        soft[token2idx[t]] = s
        mask[token2idx[t]] = 1.0
        # Iterative f32 multiply matches the reference loop's rounding exactly.
        row = np.empty((D,), dtype=np.float32)
        p = s
        for d in range(D):
            row[d] = p
            p = np.float32(p * s)
        table[token2idx[t]] = row

    return jnp.asarray(table), learned, soft, mask


def reference_forward(x, learned, soft, mask, D):
    """Pure NumPy reference matching the PyTorch nested loop."""
    x = np.asarray(x)
    B, S = x.shape
    out = np.zeros((B, S, D), dtype=np.float32)
    for i in range(B):
        for j in range(S):
            idx = int(x[i, j])
            if mask[idx] > 0.5:
                s = np.float32(soft[idx])
                p = s
                for d in range(D):
                    out[i, j, d] = p
                    p = np.float32(p * s)
            else:
                out[i, j] = learned[idx]
    return out


if __name__ == "__main__":
    tokens = ["<pad>", "<unk>", "hello", "world", "foo", "bar", "baz", "qux",
              "<num>3</num>", "<num>7</num>", "<num>42</num>", "<num>100</num>",
              "alpha", "beta", "gamma", "delta"]
    token2idx = {t: i for i, t in enumerate(tokens)}
    embedding_dim = 32
    batch, seq = 2, 8

    key = jax.random.PRNGKey(0)
    k_emb, k_x = jax.random.split(key)
    table, learned, soft, mask = build_embedding_table(
        token2idx, embedding_dim, k_emb)

    x = jax.random.randint(k_x, (batch, seq), 0, len(tokens), dtype=jnp.int32)

    out = custom_embedding_forward(x, table)
    out = jax.block_until_ready(out)

    ref = reference_forward(x, learned, soft, mask, embedding_dim)
    np.testing.assert_allclose(np.asarray(out), ref, rtol=1e-4, atol=1e-5)

    assert out.shape == (batch, seq, embedding_dim)
    print("KERNEL_OK")
</pallas_src>

<mosaic_0001>
module attributes {stable_mosaic.version = 11 : i64} {
  func.func @_embedding_kernel(%arg0: i32, %arg1: memref<16x1xi32, #tpu.memory_space<vmem>>, %arg2: memref<16x32xf32, #tpu.memory_space<vmem>>, %arg3: memref<16x32xf32, #tpu.memory_space<vmem>>) attributes {dimension_semantics = [#tpu.dimension_semantics<parallel>], iteration_bounds = array<i64: 1>, scalar_prefetch = 0 : i64, scratch_operands = 0 : i64, tpu.core_type = #tpu.core_type<tc>, window_params = [{transform_indices = @transform_0, window_bounds = array<i64: 16, 1>}, {pipeline_mode = #tpu.pipeline_mode<synchronous>, transform_indices = @transform_1, window_bounds = array<i64: 16, 32>}, {transform_indices = @transform_2, window_bounds = array<i64: 16, 32>}]} {
    %c0 = arith.constant 0 : index
    %c0_0 = arith.constant 0 : index
    %0 = vector.load %arg1[%c0, %c0_0] : memref<16x1xi32, #tpu.memory_space<vmem>>, vector<16x1xi32>
    %1 = tpu.iota {dimensions = array<i32: 1>} : vector<16x16xi32>
    %2 = vector.broadcast %0 : vector<16x1xi32> to vector<16x16xi32>
    %3 = arith.cmpi eq, %2, %1 : vector<16x16xi32>
    %4 = arith.extui %3 : vector<16x16xi1> to vector<16x16xi32>
    %5 = arith.sitofp %4 : vector<16x16xi32> to vector<16x16xf32>
    %c0_1 = arith.constant 0 : index
    %c0_2 = arith.constant 0 : index
    %6 = vector.load %arg2[%c0_1, %c0_2] : memref<16x32xf32, #tpu.memory_space<vmem>>, vector<16x32xf32>
    %cst = arith.constant dense<0.000000e+00> : vector<16x32xf32>
    %7 = tpu.matmul %5, %6, %cst {dimension_numbers = #tpu.dot_dimension_numbers<[1], [0], [0], [1], [0, 0, 1, 1], [], []>} : vector<16x16xf32>, vector<16x32xf32>, vector<16x32xf32> -> vector<16x32xf32>
    %c0_3 = arith.constant 0 : index
    %c0_4 = arith.constant 0 : index
    %8 = vector.load %arg3[%c0_3, %c0_4] : memref<16x32xf32, #tpu.memory_space<vmem>>, vector<16x32xf32>
    tpu.vector_store %arg3[%c0_3, %c0_4], %7 {strides = array<i32>} : memref<16x32xf32, #tpu.memory_space<vmem>>, vector<16x32xf32>,
    return
  }
  func.func @transform_0(%arg0: i32) -> (i32, i32) {
    %c0_i32 = arith.constant 0 : i32
    %c0_i32_0 = arith.constant 0 : i32
    return %arg0, %c0_i32 : i32, i32
  }
  func.func @transform_1(%arg0: i32) -> (i32, i32) {
    %c0_i32 = arith.constant 0 : i32
    %c0_i32_0 = arith.constant 0 : i32
    %c0_i32_1 = arith.constant 0 : i32
    return %c0_i32, %c0_i32_0 : i32, i32
  }
  func.func @transform_2(%arg0: i32) -> (i32, i32) {
    %c0_i32 = arith.constant 0 : i32
    %c0_i32_0 = arith.constant 0 : i32
    return %arg0, %c0_i32 : i32, i32
  }
}

</mosaic_0001>

<bundles_post_ra>
// kernel: tpu_custom_call.1
= control target key start
LH: loop header
LB: loop body
LE: loop exit
PB: predicated region body
PF: predicated region fallthrough
CT: control target
= control target key end

     0   :  { %s224_s0 = inlined_call_operand.vmem [shape: s32[16,1], index: 0, kind: input, shape index: {}]   ;;  %s225_s1 = inlined_call_operand.vmem [shape: f32[16,32], index: 1, kind: input, shape index: {}]   ;;  %s226_s2 = inlined_call_operand.hbm [shape: f32[16,32], index: 2, kind: output, shape index: {}]  }
   0x1   :  { %v12_v0 = vld [vmem:[%s224_s0] sm:$0xff] }
   0x2   :  { %7 = vsyncpa [#allocation3], 0  ;;  %v180_v1 = vmov 0   ;;  %v28_v2 = vld [vmem:[%s225_s1] sm:$0xff]  ;;  %v29_v3 = vld [vmem:[%s225_s1 + $0x8] sm:$0xff]  ;;  %v14_v6 = vlaneseq  ;;  %vm30_vm0 = vcmask 130048  }
   0x3   :  { %155 = vset.pattern.permute.xlu0 %v180_v1  ;;  %v146_v4 = vpack.c.bf16 %v29_v3, %v28_v2  ;;  %v13_v5 = vld [vmem:[%s224_s0 + $0x8] sm:$0xff]  ;;  %v181_v9 = vmov 0.0   ;;  %s182_s1 = smov [#allocation2]   ;;  %vm112_vm3 = vcmask 261120  }
   0x4   :  { %17 = vperm.xlu0 %155, %v12_v0   ;;  %v15_v7 = vand.u32 127, %v14_v6  ;;  %s120_s17 = sshll.u32 %s182_s1, 4  ;;  %s121_s17 = int_to_ptr.vmem [resolvable:$true] %s120_s17 }
   0x5   :  { %147 = vmatprep.subr.bf16.mxu0 %v146_v4  ;;  %s156_s0 = scalar_lea.vmem %s121_s17, 256  ;;  %p161_p1 = scmp.lt.s32.totalorder %s121_s17, %s121_s17 }
   0x6   :  { %149 = vmatpush3.bf16.msra.mxu0 %v146_v4  ;;  %p157_p0 = scmp.ne.s32.totalorder %s121_s17, %s156_s0  ;;  %p162_p2 = scmp.lt.s32.totalorder %s156_s0, %s156_s0 }
   0x8   :  { %20 = vperm.xlu0 %155, %v13_v5   ;;  %p163_p3 = por %p162_p2, %p161_p1 }
   0xa   :  { %p164_p4 = pnand %p163_p3, %p157_p0 }
  0x83   :  { %v18_v8 = vpop.permute.xlu0 %17 }
  0x84   :  { %vm22_vm1 = vcmp.eq.s32.totalorder %v18_v8, %v15_v7 }
  0x85   :  { %v131_v10 = vsel %vm22_vm1, 1.0, %v181_v9 }
  0x86   :  { %143 = vmatprep.mubr.msk.f32.mxu0 %vm30_vm0, %v131_v10 }
  0x87   :  { %v21_v11 = vpop.permute.xlu0 %20 }
  0x88   :  { %vm23_vm2 = vcmp.eq.s32.totalorder %v21_v11, %v15_v7 }
  0x89   :  { %v132_v12 = vsel %vm23_vm2, 1.0, %v181_v9 }
  0x8a   :  { %144 = vmatmul.mubr.msk.f32.vlgmr.msra.gmra.mrb[0].mxu0 %vm30_vm0, %v132_v12 }
 0x15d   :  { %v145_v13 = vpop.f32.mrb[0].mxu0 }
 0x15e   :  { %114 = vst.msk [vmem:[#allocation2 + $0x8] sm:$0xff] %vm112_vm3, %v145_v13  ;;  %v103_v14 = vpop.f32.mrb[1].mxu0 }
 0x15f   :  { %113 = vst.msk [vmem:[#allocation2] sm:$0xff] %vm112_vm3, %v103_v14 }
 0x160   :  { %167 = shalt.err (!%p164_p4)
}
 0x161   :  { %s168_s20 = scalar_lea.hbm %s226_s2, 256 }
 0x162   :  { %p169_p5 = scmp.ne.s32.totalorder %s226_s2, %s168_s20  ;;  %p172_p6 = scmp.lt.u32.totalorder %s168_s20, %s226_s2 }
 0x164   :  { %p174_p7 = pnand %p172_p6, %p169_p5 }
 0x166   :  { %177 = shalt.err (!%p174_p7)
}
 0x167   :  { %s183_s25 = smov 128   ;;  %s184_s26 = smov 8  }
 0x168   :  { %126 = dma.vmem_to_hbm [thread:$0]  %s121_s17, 256, %s226_s2, [#allocation3], %s183_s25, %s183_s25, %s184_s26  }
 0x169   :  { %178 = dma.done.wait [#allocation3], 256  }
 0x16a   :  { %179 = vsyncadd [#allocation3], 4294967040 }
 0x16b   :  { %130 = vsyncpa [#allocation3], 1 }

</bundles_post_ra>
